<compile_context>
chip_gen: v7x
topology: tpu7x:2x2x1
jax: 0.10.0
libtpu: 0.0.40
codegen_flags: <defaults>
</compile_context>

<pallas_src>
import jax
import jax.numpy as jnp
import numpy as np
from jax import lax
from jax.experimental import pallas as pl
from jax.experimental.pallas import tpu as pltpu


def _compressive_memory_kernel(q_ref, k_ref, v_ref, attn_ref, beta_ref, z_ref, memc_ref,
                               out_ref, new_mem_ref, new_z_ref):
    """One grid step == one batch element, all heads packed along the lane axis."""
    hd = q_ref.shape[-1]           # H * D (lane-dense, 128 at the test config)

    q = q_ref[0]                   # (S, HD)
    k = k_ref[0]                   # (S, HD)
    v = v_ref[0]                   # (S, HD)
    attn = attn_ref[0]             # (S, HD)
    beta = beta_ref[...]           # (1, HD)
    z = z_ref[...]                 # (1, HD)
    memc = memc_ref[...]           # (HD, 2*HD) == [block_diag(M_h) | per-head z broadcast]

    # sigma(x) = elu(x) + 1  ->  x+1 for x>0, exp(x) for x<=0
    sq = jnp.where(q > 0, q + 1.0, jnp.exp(q))
    sk = jnp.where(k > 0, k + 1.0, jnp.exp(k))

    # One MXU matmul per projection: cols [:HD] = per-head numerators (block-diagonal
    # memory), cols [HD:] = per-head denominators already broadcast across each head's
    # D lanes (z folded into the packed matrix) — no XLU cross-lane reduce needed.
    qm = jnp.dot(sq, memc, preferred_element_type=jnp.float32)   # (S, 2*HD)
    km = jnp.dot(sk, memc, preferred_element_type=jnp.float32)   # (S, 2*HD)

    mem_out = qm[:, :hd] * pl.reciprocal(qm[:, hd:], approx=False)     # (S, HD)
    retrieved = km[:, :hd] * pl.reciprocal(km[:, hd:], approx=False)   # (S, HD)

    # Delta rule: one 128-wide sk^T @ (v - retrieved) instead of H separate 32-wide ones.
    value_delta = v - retrieved                                         # (S, HD)
    delta = lax.dot_general(sk, value_delta, (((0,), (0,)), ((), ())),
                            preferred_element_type=jnp.float32)         # (HD, HD)
    # Diagonal (D,D) blocks hold the exact per-head updates (off-diagonal blocks are
    # cross-head garbage discarded in the wrapper). Lane-dense 128-wide store.
    new_mem_ref[0] = memc[:, :hd] + delta

    # new_z (lane-dense packed layout): z + sum over the sequence of sigma_k.
    new_z_ref[0] = z + jnp.sum(sk, axis=0, keepdims=True)               # (1, HD)

    # Gated blend: sigmoid(beta) * memory_output + (1 - sigmoid(beta)) * attention_output
    gate = jax.nn.sigmoid(beta)                                         # (1, HD)
    out_ref[0] = (gate * mem_out + (1.0 - gate) * attn).astype(out_ref.dtype)


def compressive_memory_forward(q, k, v, attention_output, betas, init_mem, init_z):
    """Returns (blended_output, new_memory_states, new_memory_z).

    q/k/v/attention_output: (B, H, S, D)
    betas:    (1, H, 1, D)
    init_mem: (1, H, D, D)
    init_z:   (1, H, D, 1)
    """
    B, H, S, D = q.shape
    HD = H * D

    # ---- wrapper-side layout plumbing (lane-dense packing) ------------------------
    def pack(x):  # (B, H, S, D) -> (B, S, H*D)
        return jnp.transpose(x, (0, 2, 1, 3)).reshape(B, S, HD)

    q_p, k_p, v_p, a_p = pack(q), pack(k), pack(v), pack(attention_output)
    beta_p = betas.reshape(1, HD)                       # (1, H, 1, D) -> (1, HD)
    z_flat = init_z.reshape(H, D)                       # (1, H, D, 1) -> (H, D)
    z_p = z_flat.reshape(1, HD)

    # Packed memory, built once per call from the parameters:
    #   memc[:, :HD][h*D+d, g*D+j]  = M[h, d, j] * (h == g)         (block diagonal)
    #   memc[:, HD:][h*D+d, g*D+j'] = z[h, d]    * (h == g)         (denominator broadcast)
    eye_h = jnp.eye(H, dtype=init_mem.dtype)
    mem_bd = (init_mem[0][:, :, None, :] * eye_h[:, None, :, None]).reshape(HD, HD)
    z_rep = jnp.broadcast_to(
        z_flat[:, :, None, None] * eye_h[:, None, :, None], (H, D, H, D)).reshape(HD, HD)
    mem_combined = jnp.concatenate([mem_bd, z_rep], axis=-1)            # (HD, 2*HD)

    seq_spec = pl.BlockSpec((1, S, HD), lambda b: (b, 0, 0))
    row_spec = pl.BlockSpec((1, HD), lambda b: (0, 0))

    out_p, new_mem_bd, new_z_p = pl.pallas_call(
        _compressive_memory_kernel,
        out_shape=(
            jax.ShapeDtypeStruct((B, S, HD), q.dtype),
            jax.ShapeDtypeStruct((B, HD, HD), jnp.float32),
            jax.ShapeDtypeStruct((B, 1, HD), jnp.float32),
        ),
        grid_spec=pltpu.PrefetchScalarGridSpec(
            num_scalar_prefetch=0,
            grid=(B,),
            in_specs=[
                seq_spec,                                   # q  (packed)
                seq_spec,                                   # k  (packed)
                seq_spec,                                   # v  (packed)
                seq_spec,                                   # attention_output (packed)
                row_spec,                                   # betas (packed)
                row_spec,                                   # z     (packed)
                pl.BlockSpec((HD, 2 * HD), lambda b: (0, 0)),  # packed memory (+z)
            ],
            out_specs=[
                seq_spec,                                       # blended output (packed)
                pl.BlockSpec((1, HD, HD), lambda b: (b, 0, 0)),  # memory update (block form)
                pl.BlockSpec((1, 1, HD), lambda b: (b, 0, 0)),   # new z (packed)
            ],
        ),
        compiler_params=pltpu.CompilerParams(
            dimension_semantics=("parallel",)),   # keep B parallel (v7x: 2 TensorCores)
    )(q_p, k_p, v_p, a_p, beta_p, z_p, mem_combined)

    # ---- unpack back to the PyTorch layouts ---------------------------------------
    out = jnp.transpose(out_p.reshape(B, S, H, D), (0, 2, 1, 3))         # (B, H, S, D)
    hidx = jnp.arange(H)
    new_mem = jnp.transpose(
        new_mem_bd.reshape(B, H, D, H, D)[:, hidx, :, hidx, :],          # -> (H, B, D, D)
        (1, 0, 2, 3))                                                    # (B, H, D, D)
    new_z = new_z_p.reshape(B, H, D, 1)                                  # (B, H, D, 1)
    return out, new_mem, new_z


def _reference(q, k, v, attention_output, betas, init_mem, init_z):
    """Pure-JAX mirror of the PyTorch forward for verification."""
    sigma_q = jax.nn.elu(q) + 1.0
    memory_output = jnp.matmul(sigma_q, init_mem) / jnp.matmul(sigma_q, init_z)
    sigma_k = jax.nn.elu(k) + 1.0
    retrieved = jnp.matmul(sigma_k, init_mem) / jnp.matmul(sigma_k, init_z)
    value_delta = v - retrieved
    new_states = init_mem + jnp.matmul(jnp.swapaxes(sigma_k, -2, -1), value_delta)
    new_z = init_z + jnp.swapaxes(jnp.sum(sigma_k, axis=-2, keepdims=True), -2, -1)
    gate = jax.nn.sigmoid(betas)
    out = gate * memory_output + (1.0 - gate) * attention_output
    return out, new_states, new_z


if __name__ == "__main__":
    # Config: num_heads=2, num_queries=2 -> num_query_heads=4; head_size=32; seq=8; batch=2.
    B, H, S, D = 2, 4, 8, 32

    key = jax.random.PRNGKey(0)
    kq, kk, kv, ka, km = jax.random.split(key, 5)

    q = jax.random.normal(kq, (B, H, S, D), dtype=jnp.float32)
    k = jax.random.normal(kk, (B, H, S, D), dtype=jnp.float32)
    v = jax.random.normal(kv, (B, H, S, D), dtype=jnp.float32)
    attention_output = jax.random.normal(ka, (B, H, S, D), dtype=jnp.float32)

    # Deterministic parameter init (matches module __init__ shapes):
    betas = jnp.zeros((1, H, 1, D), dtype=jnp.float32)                    # nn.Parameter(zeros)
    init_mem = jax.random.normal(km, (1, H, D, D), dtype=jnp.float32)     # nn.Parameter(randn)
    init_z = jnp.ones((1, H, D, 1), dtype=jnp.float32)                    # nn.Parameter(ones)

    out, new_mem, new_z = compressive_memory_forward(
        q, k, v, attention_output, betas, init_mem, init_z)
    jax.block_until_ready((out, new_mem, new_z))

    ref_out, ref_mem, ref_z = _reference(q, k, v, attention_output, betas, init_mem, init_z)
    np.testing.assert_allclose(np.asarray(out), np.asarray(ref_out), rtol=1e-5, atol=1e-5)
    np.testing.assert_allclose(np.asarray(new_mem), np.asarray(ref_mem), rtol=1e-5, atol=1e-5)
    np.testing.assert_allclose(np.asarray(new_z), np.asarray(ref_z), rtol=1e-5, atol=1e-5)

    print("KERNEL_OK")
</pallas_src>

<mosaic_0001>
module attributes {stable_mosaic.version = 11 : i64} {
  func.func @_compressive_memory_kernel(%arg0: i32, %arg1: memref<1x8x128xf32, #tpu.memory_space<vmem>>, %arg2: memref<1x8x128xf32, #tpu.memory_space<vmem>>, %arg3: memref<1x8x128xf32, #tpu.memory_space<vmem>>, %arg4: memref<1x8x128xf32, #tpu.memory_space<vmem>>, %arg5: memref<1x128xf32, #tpu.memory_space<vmem>>, %arg6: memref<1x128xf32, #tpu.memory_space<vmem>>, %arg7: memref<128x256xf32, #tpu.memory_space<vmem>>, %arg8: memref<1x8x128xf32, #tpu.memory_space<vmem>>, %arg9: memref<1x128x128xf32, #tpu.memory_space<vmem>>, %arg10: memref<1x1x128xf32, #tpu.memory_space<vmem>>) attributes {dimension_semantics = [#tpu.dimension_semantics<parallel>], iteration_bounds = array<i64: 2>, scalar_prefetch = 0 : i64, scratch_operands = 0 : i64, tpu.core_type = #tpu.core_type<tc>, window_params = [{transform_indices = @transform_0, window_bounds = array<i64: 1, 8, 128>}, {transform_indices = @transform_1, window_bounds = array<i64: 1, 8, 128>}, {transform_indices = @transform_2, window_bounds = array<i64: 1, 8, 128>}, {transform_indices = @transform_3, window_bounds = array<i64: 1, 8, 128>}, {pipeline_mode = #tpu.pipeline_mode<synchronous>, transform_indices = @transform_4, window_bounds = array<i64: 1, 128>}, {pipeline_mode = #tpu.pipeline_mode<synchronous>, transform_indices = @transform_5, window_bounds = array<i64: 1, 128>}, {pipeline_mode = #tpu.pipeline_mode<synchronous>, transform_indices = @transform_6, window_bounds = array<i64: 128, 256>}, {transform_indices = @transform_7, window_bounds = array<i64: 1, 8, 128>}, {transform_indices = @transform_8, window_bounds = array<i64: 1, 128, 128>}, {transform_indices = @transform_9, window_bounds = array<i64: 1, 1, 128>}]} {
    %c0 = arith.constant 0 : index
    %c0_0 = arith.constant 0 : index
    %c0_1 = arith.constant 0 : index
    %0 = vector.load %arg1[%c0, %c0_0, %c0_1] : memref<1x8x128xf32, #tpu.memory_space<vmem>>, vector<1x8x128xf32>
    %1 = vector.shape_cast %0 : vector<1x8x128xf32> to vector<8x128xf32>
    %c0_2 = arith.constant 0 : index
    %c0_3 = arith.constant 0 : index
    %c0_4 = arith.constant 0 : index
    %2 = vector.load %arg2[%c0_2, %c0_3, %c0_4] : memref<1x8x128xf32, #tpu.memory_space<vmem>>, vector<1x8x128xf32>
    %3 = vector.shape_cast %2 : vector<1x8x128xf32> to vector<8x128xf32>
    %c0_5 = arith.constant 0 : index
    %c0_6 = arith.constant 0 : index
    %c0_7 = arith.constant 0 : index
    %4 = vector.load %arg3[%c0_5, %c0_6, %c0_7] : memref<1x8x128xf32, #tpu.memory_space<vmem>>, vector<1x8x128xf32>
    %5 = vector.shape_cast %4 : vector<1x8x128xf32> to vector<8x128xf32>
    %c0_8 = arith.constant 0 : index
    %c0_9 = arith.constant 0 : index
    %c0_10 = arith.constant 0 : index
    %6 = vector.load %arg4[%c0_8, %c0_9, %c0_10] : memref<1x8x128xf32, #tpu.memory_space<vmem>>, vector<1x8x128xf32>
    %7 = vector.shape_cast %6 : vector<1x8x128xf32> to vector<8x128xf32>
    %c0_11 = arith.constant 0 : index
    %c0_12 = arith.constant 0 : index
    %8 = vector.load %arg5[%c0_11, %c0_12] : memref<1x128xf32, #tpu.memory_space<vmem>>, vector<1x128xf32>
    %c0_13 = arith.constant 0 : index
    %c0_14 = arith.constant 0 : index
    %9 = vector.load %arg6[%c0_13, %c0_14] : memref<1x128xf32, #tpu.memory_space<vmem>>, vector<1x128xf32>
    %c0_15 = arith.constant 0 : index
    %c0_16 = arith.constant 0 : index
    %10 = vector.load %arg7[%c0_15, %c0_16] : memref<128x256xf32, #tpu.memory_space<vmem>>, vector<128x256xf32>
    %cst = arith.constant 0.000000e+00 : f32
    %11 = vector.broadcast %cst : f32 to vector<8x128xf32>
    %12 = arith.cmpf ogt, %1, %11 : vector<8x128xf32>
    %cst_17 = arith.constant 1.000000e+00 : f32
    %13 = vector.broadcast %cst_17 : f32 to vector<8x128xf32>
    %14 = arith.addf %1, %13 : vector<8x128xf32>
    %15 = math.exp %1 : vector<8x128xf32>
    %16 = arith.select %12, %14, %15 : vector<8x128xi1>, vector<8x128xf32>
    %cst_18 = arith.constant 0.000000e+00 : f32
    %17 = vector.broadcast %cst_18 : f32 to vector<8x128xf32>
    %18 = arith.cmpf ogt, %3, %17 : vector<8x128xf32>
    %cst_19 = arith.constant 1.000000e+00 : f32
    %19 = vector.broadcast %cst_19 : f32 to vector<8x128xf32>
    %20 = arith.addf %3, %19 : vector<8x128xf32>
    %21 = math.exp %3 : vector<8x128xf32>
    %22 = arith.select %18, %20, %21 : vector<8x128xi1>, vector<8x128xf32>
    %cst_20 = arith.constant dense<0.000000e+00> : vector<8x256xf32>
    %23 = tpu.matmul %16, %10, %cst_20 {dimension_numbers = #tpu.dot_dimension_numbers<[1], [0], [0], [1], [0, 0, 1, 1], [], []>} : vector<8x128xf32>, vector<128x256xf32>, vector<8x256xf32> -> vector<8x256xf32>
    %cst_21 = arith.constant dense<0.000000e+00> : vector<8x256xf32>
    %24 = tpu.matmul %22, %10, %cst_21 {dimension_numbers = #tpu.dot_dimension_numbers<[1], [0], [0], [1], [0, 0, 1, 1], [], []>} : vector<8x128xf32>, vector<128x256xf32>, vector<8x256xf32> -> vector<8x256xf32>
    %25 = vector.extract_strided_slice %23 {offsets = [0, 0], sizes = [8, 128], strides = [1, 1]} : vector<8x256xf32> to vector<8x128xf32>
    %26 = vector.extract_strided_slice %23 {offsets = [0, 128], sizes = [8, 128], strides = [1, 1]} : vector<8x256xf32> to vector<8x128xf32>
    %27 = tpu.reciprocal %26 : vector<8x128xf32> -> vector<8x128xf32>
    %28 = arith.mulf %25, %27 : vector<8x128xf32>
    %29 = vector.extract_strided_slice %24 {offsets = [0, 0], sizes = [8, 128], strides = [1, 1]} : vector<8x256xf32> to vector<8x128xf32>
    %30 = vector.extract_strided_slice %24 {offsets = [0, 128], sizes = [8, 128], strides = [1, 1]} : vector<8x256xf32> to vector<8x128xf32>
    %31 = tpu.reciprocal %30 : vector<8x128xf32> -> vector<8x128xf32>
    %32 = arith.mulf %29, %31 : vector<8x128xf32>
    %33 = arith.subf %5, %32 : vector<8x128xf32>
    %cst_22 = arith.constant dense<0.000000e+00> : vector<128x128xf32>
    %34 = tpu.matmul %22, %33, %cst_22 {dimension_numbers = #tpu.dot_dimension_numbers<[0], [0], [1], [1], [0, 1, 1, 1], [], []>} : vector<8x128xf32>, vector<8x128xf32>, vector<128x128xf32> -> vector<128x128xf32>
    %35 = vector.extract_strided_slice %10 {offsets = [0, 0], sizes = [128, 128], strides = [1, 1]} : vector<128x256xf32> to vector<128x128xf32>
    %36 = arith.addf %35, %34 : vector<128x128xf32>
    %c0_23 = arith.constant 0 : index
    %c0_24 = arith.constant 0 : index
    %c0_25 = arith.constant 0 : index
    %37 = vector.load %arg9[%c0_23, %c0_24, %c0_25] : memref<1x128x128xf32, #tpu.memory_space<vmem>>, vector<1x128x128xf32>
    %38 = vector.shape_cast %37 : vector<1x128x128xf32> to vector<128x128xf32>
    %39 = vector.shape_cast %36 : vector<128x128xf32> to vector<1x128x128xf32>
    tpu.vector_store %arg9[%c0_23, %c0_24, %c0_25], %39 {strides = array<i32>} : memref<1x128x128xf32, #tpu.memory_space<vmem>>, vector<1x128x128xf32>,
    %cst_26 = arith.constant dense<0.000000e+00> : vector<128xf32>
    %40 = vector.multi_reduction <add>, %22, %cst_26 [0] : vector<8x128xf32> to vector<128xf32>
    %41 = vector.shape_cast %40 : vector<128xf32> to vector<1x128xf32>
    %42 = arith.addf %9, %41 : vector<1x128xf32>
    %c0_27 = arith.constant 0 : index
    %c0_28 = arith.constant 0 : index
    %c0_29 = arith.constant 0 : index
    %43 = vector.load %arg10[%c0_27, %c0_28, %c0_29] : memref<1x1x128xf32, #tpu.memory_space<vmem>>, vector<1x1x128xf32>
    %44 = vector.shape_cast %43 : vector<1x1x128xf32> to vector<1x128xf32>
    %45 = vector.shape_cast %42 : vector<1x128xf32> to vector<1x1x128xf32>
    tpu.vector_store %arg10[%c0_27, %c0_28, %c0_29], %45 {strides = array<i32>} : memref<1x1x128xf32, #tpu.memory_space<vmem>>, vector<1x1x128xf32>,
    %46 = arith.negf %8 : vector<1x128xf32>
    %47 = math.exp %46 : vector<1x128xf32>
    %cst_30 = arith.constant 1.000000e+00 : f32
    %48 = vector.broadcast %cst_30 : f32 to vector<1x128xf32>
    %49 = arith.addf %48, %47 : vector<1x128xf32>
    %50 = arith.divf %48, %49 : vector<1x128xf32>
    %51 = vector.broadcast %50 : vector<1x128xf32> to vector<8x128xf32>
    %52 = arith.mulf %51, %28 : vector<8x128xf32>
    %cst_31 = arith.constant 1.000000e+00 : f32
    %53 = vector.broadcast %cst_31 : f32 to vector<1x128xf32>
    %54 = arith.subf %53, %50 : vector<1x128xf32>
    %55 = vector.broadcast %54 : vector<1x128xf32> to vector<8x128xf32>
    %56 = arith.mulf %55, %7 : vector<8x128xf32>
    %57 = arith.addf %52, %56 : vector<8x128xf32>
    %c0_32 = arith.constant 0 : index
    %c0_33 = arith.constant 0 : index
    %c0_34 = arith.constant 0 : index
    %58 = vector.load %arg8[%c0_32, %c0_33, %c0_34] : memref<1x8x128xf32, #tpu.memory_space<vmem>>, vector<1x8x128xf32>
    %59 = vector.shape_cast %58 : vector<1x8x128xf32> to vector<8x128xf32>
    %60 = vector.shape_cast %57 : vector<8x128xf32> to vector<1x8x128xf32>
    tpu.vector_store %arg8[%c0_32, %c0_33, %c0_34], %60 {strides = array<i32>} : memref<1x8x128xf32, #tpu.memory_space<vmem>>, vector<1x8x128xf32>,
    return
  }
  func.func @transform_0(%arg0: i32) -> (i32, i32, i32) {
    %c0_i32 = arith.constant 0 : i32
    %c0_i32_0 = arith.constant 0 : i32
    %c0_i32_1 = arith.constant 0 : i32
    return %arg0, %c0_i32, %c0_i32_0 : i32, i32, i32
  }
  func.func @transform_1(%arg0: i32) -> (i32, i32, i32) {
    %c0_i32 = arith.constant 0 : i32
    %c0_i32_0 = arith.constant 0 : i32
    %c0_i32_1 = arith.constant 0 : i32
    return %arg0, %c0_i32, %c0_i32_0 : i32, i32, i32
  }
  func.func @transform_2(%arg0: i32) -> (i32, i32, i32) {
    %c0_i32 = arith.constant 0 : i32
    %c0_i32_0 = arith.constant 0 : i32
    %c0_i32_1 = arith.constant 0 : i32
    return %arg0, %c0_i32, %c0_i32_0 : i32, i32, i32
  }
  func.func @transform_3(%arg0: i32) -> (i32, i32, i32) {
    %c0_i32 = arith.constant 0 : i32
    %c0_i32_0 = arith.constant 0 : i32
    %c0_i32_1 = arith.constant 0 : i32
    return %arg0, %c0_i32, %c0_i32_0 : i32, i32, i32
  }
  func.func @transform_4(%arg0: i32) -> (i32, i32) {
    %c0_i32 = arith.constant 0 : i32
    %c0_i32_0 = arith.constant 0 : i32
    %c0_i32_1 = arith.constant 0 : i32
    return %c0_i32, %c0_i32_0 : i32, i32
  }
  func.func @transform_5(%arg0: i32) -> (i32, i32) {
    %c0_i32 = arith.constant 0 : i32
    %c0_i32_0 = arith.constant 0 : i32
    %c0_i32_1 = arith.constant 0 : i32
    return %c0_i32, %c0_i32_0 : i32, i32
  }
  func.func @transform_6(%arg0: i32) -> (i32, i32) {
    %c0_i32 = arith.constant 0 : i32
    %c0_i32_0 = arith.constant 0 : i32
    %c0_i32_1 = arith.constant 0 : i32
    return %c0_i32, %c0_i32_0 : i32, i32
  }
  func.func @transform_7(%arg0: i32) -> (i32, i32, i32) {
    %c0_i32 = arith.constant 0 : i32
    %c0_i32_0 = arith.constant 0 : i32
    %c0_i32_1 = arith.constant 0 : i32
    return %arg0, %c0_i32, %c0_i32_0 : i32, i32, i32
  }
  func.func @transform_8(%arg0: i32) -> (i32, i32, i32) {
    %c0_i32 = arith.constant 0 : i32
    %c0_i32_0 = arith.constant 0 : i32
    %c0_i32_1 = arith.constant 0 : i32
    return %arg0, %c0_i32, %c0_i32_0 : i32, i32, i32
  }
  func.func @transform_9(%arg0: i32) -> (i32, i32, i32) {
    %c0_i32 = arith.constant 0 : i32
    %c0_i32_0 = arith.constant 0 : i32
    %c0_i32_1 = arith.constant 0 : i32
    return %arg0, %c0_i32, %c0_i32_0 : i32, i32, i32
  }
}

</mosaic_0001>

<bundles_post_ra>
// kernel: tpu_custom_call.1
= control target key start
LH: loop header
LB: loop body
LE: loop exit
PB: predicated region body
PF: predicated region fallthrough
CT: control target
= control target key end

     0   :  { %s2325_s0 = inlined_call_operand.hbm [shape: f32[2,8,128], index: 0, kind: input, shape index: {}]   ;;  %s2326_s1 = inlined_call_operand.hbm [shape: f32[2,8,128], index: 1, kind: input, shape index: {}]   ;;  %s2327_s2 = inlined_call_operand.hbm [shape: f32[2,8,128], index: 2, kind: input, shape index: {}]   ;;  %s2328_s3 = inlined_call_operand.hbm [shape: f32[2,8,128], index: 3, kind: input, shape index: {}]   ;;  %s2329_s4 = inlined_call_operand.vmem [shape: f32[1,128], index: 4, kind: input, shape index: {}]   ;;  %s2330_s5 = inlined_call_operand.vmem [shape: f32[1,128], index: 5, kind: input, shape index: {}]   ;;  %s2331_s6 = inlined_call_operand.hbm [shape: f32[128,256], index: 6, kind: input, shape index: {}]   ;;  %s2332_s7 = inlined_call_operand.hbm [shape: f32[2,8,128], index: 7, kind: output, shape index: {0}]   ;;  %s2333_s8 = inlined_call_operand.hbm [shape: f32[2,128,128], index: 8, kind: output, shape index: {1}]   ;;  %s2334_s9 = inlined_call_operand.hbm [shape: f32[2,1,128], index: 9, kind: output, shape index: {2}]  }
   0x1   :  { %2349 = sst [smem:[#allocation26_spill]] %s2326_s1 }
   0x2   :  { %2350 = sst [smem:[#allocation27_spill]] %s2331_s6 }
   0x3   :  { %15 = vsyncpa [#allocation3], 0 }
   0x4   :  { %17 = vsyncpa [#allocation3 + $0x1], 0 }
   0x5   :  { %18 = vsyncpa [#allocation6], 0 }
   0x6   :  { %20 = vsyncpa [#allocation6 + $0x1], 0 }
   0x7   :  { %21 = vsyncpa [#allocation9], 0 }
   0x8   :  { %23 = vsyncpa [#allocation9 + $0x1], 0 }
   0x9   :  { %24 = vsyncpa [#allocation4], 0 }
   0xa   :  { %26 = vsyncpa [#allocation4 + $0x1], 0 }
   0xb   :  { %27 = vsyncpa [#allocation13], 0 }
   0xc   :  { %29 = vsyncpa [#allocation13 + $0x1], 0  ;;  %s1830_s30 = smov 0   ;;  %s1832_s10 = smov 0  }
   0xd   :  { %s1834_s11 = smov 0   ;;  %s1836_s12 = smov 0  }
   0xe LB: > { %2351 = sst [smem:[#allocation21_spill]] %s1753_s30  ;;  %s1851_s13 = sadd.s32 4294967295, %s1765_s12   ;;  %s1765_s12 = sphi %s1836_s12, %s2381_s12   ;;  %s1761_s11 = sphi %s1834_s11, %s2383_s11   ;;  %s1757_s10 = sphi %s1832_s10, %s2385_s10   ;;  %s1753_s30 = sphi %s1830_s30, %s2384_s30  }
   0xf   : > { %2352 = sst [smem:[#allocation22_spill]] %s1761_s11  ;;  %s2335_s14 = sadd.s32 4294967294, %s1765_s12  }
  0x10   : > { %p55_p0 = scmp.ne.s32.totalorder %s1757_s10, %s1753_s30  ;;  %p2336_p1 = scmp.eq.s32.totalorder %s1851_s13, 0 }
  0x11   : > { %p226_p3 = scmp.eq.s32.totalorder %s2335_s14, 1  ;;  %p1226_p5 = scmp.ge.s32.totalorder %s1765_s12, 1 }
  0x12   : > { %p1862_p4 = por %p2336_p1, %p55_p0  ;;  %p285_p7 = scmp.lt.s32.totalorder %s1765_s12, 3 }
  0x13   : > { %p1867_p6 = por %p226_p3, %p55_p0  ;;  %s1767_s18 = smov [#allocation10]  }
  0x14   : > { %s2353_s15 = scalar_select %p1862_p4, 1, 0 }
  0x15   : > { %s2354_s16 = scalar_select %p1867_p6, 1, 0 }
  0x16   : > { %p1872_p8 = pnand %p1226_p5, %p285_p7  ;;  %s303_s19 = sshll.u32 %s1767_s18, 4  ;;  %s1876_s19 = int_to_ptr.vmem [resolvable:$true] %s303_s19 }
  0x17   : > { %2355 = sst [smem:[#allocation23_spill]] %s2354_s16  ;;  %s1888_s21 = sadd.s32 1, %s1765_s12  }
  0x18   : > { %s2356_s17 = scalar_select %p1872_p8, 1, 0 }
  0x19   : > { %p1398_p9 = pneg %p1872_p8  ;;  %2358 = sst [smem:[#allocation24_spill]] %s1888_s21 }
  0x1a   : > { %s42_s22 = sadd.s32 1, %s1761_s11  ;;  %s39_s23 = ssub.s32 %s1765_s12, %s1888_s21 }
  0x1b   : > { %p1883_p11 = pnand %p1398_p9, %p2336_p1  ;;  %s2359_s6 = sld [smem:[#allocation27_spill]] }
  0x1d   : > { %p1481_p13 = pneg %p1883_p11 }
  0x21   : > { %s1479_s26 = scalar_lea.hbm %s2359_s6, 4096 }
  0x22   : > { %p1480_p12 = scmp.ne.s32.totalorder %s2359_s6, %s1479_s26  ;;  %p1486_p5 = scmp.lt.u32.totalorder %s1479_s26, %s2359_s6 }
  0x24   : > { %p1482_p0 = pnand %p1481_p13, %p1480_p12 }
  0x26   : > { %p1483_p3 = pneg %p1482_p0 }
  0x28   : > { %p1488_p7 = pnand %p1486_p5, %p1483_p3 }
  0x2a   : > { %1491 = shalt.err (!%p1488_p7)
}
  0x2b   : > { %s1492_s14 = scalar_lea.vmem %s1876_s19, 4096  ;;  %p1500_p2 = scmp.lt.s32.totalorder %s1876_s19, %s1876_s19 }
  0x2c   : > { %p1493_p9 = scmp.ne.s32.totalorder %s1876_s19, %s1492_s14  ;;  %p1501_p6 = scmp.lt.s32.totalorder %s1492_s14, %s1492_s14 }
  0x2e   : > { %p1495_p10 = pnand %p1493_p9, %p1481_p13  ;;  %p1502_p4 = por %p1501_p6, %p1500_p2 }
  0x30   : > { %p1496_p1 = pneg %p1495_p10 }
  0x32   : > { %p1503_p8 = pnand %p1502_p4, %p1496_p1 }
  0x34   : > { %1506 = shalt.err (!%p1503_p8)
}
  0x35   : > { %s1768_s24 = smov 256   ;;  %s1769_s25 = smov 16  }
  0x36   : > { %1401 = dma.hbm_to_vmem [thread:$0]  (!%p1883_p11), %s2359_s6, 4096, %s1876_s19, [#allocation9], %s1768_s24, %s1768_s24, %s1769_s25  }
  0x37   : > { %p40_p1 = scmp.eq.s32.totalorder %s39_s23, 0  ;;  %p49_p2 = scmp.ne.s32.totalorder %s1761_s11, %s1757_s10 }
  0x38   : > { %p50_p4 = scmp.eq.s32.totalorder %s1765_s12, 0  ;;  %p1426_p6 = scmp.lt.s32.totalorder %s1765_s12, 2 }
  0x39   : > { %s1919_s27 = scalar_select %p40_p1, %s1761_s11, %s42_s22  }
  0x3a   : > { %p51_p8 = por %p50_p4, %p49_p2  ;;  %p2361_p10 = scmp.eq.s32.totalorder %s1851_s13, 1 }
  0x3b   : > { %2360 = sst [smem:[#allocation25_spill]] %s1919_s27  ;;  %s2339_s29 = sand.u32 1, %s1761_s11  }
  0x3c   : > { %p1923_p12 = por %p2361_p10, %p49_p2  ;;  %s1929_s18 = sshll.u32 %s1765_s12, 7 }
  0x3d   : > { %s1933_s20 = sshll.u32 %s2339_s29, 3  ;;  %p1935_p11 = pnand %p1426_p6, %p51_p8 }
  0x3e   : > { %s2362_s28 = scalar_select %p1923_p12, 1, 0 }
  0x3f   : > { %s2363_s19 = scalar_select %p1935_p11, 1, 0 }
  0x40   : > { %s2343_s22 = sand.u32 1, %s1765_s12   ;;  %s2364_s1 = sld [smem:[#allocation26_spill]] }
  0x41   : > { %s339_s26 = scalar_lea.vmem [#allocation5], %s1933_s20  ;;  %s1951_s29 = scalar_lea.sflag [#allocation6], %s2343_s22 }
  0x42   : > { %s346_s14 = sshll.u32 %s339_s26, 4  ;;  %p1957_p0 = pneg %p1935_p11  ;;  %s1947_s14 = int_to_ptr.vmem [resolvable:$true] %s346_s14 }
  0x46   : > { %s1944_s25 = scalar_lea.hbm %s2364_s1, %s1929_s18  ;;  %s1512_s26 = scalar_lea.hbm %s2364_s1, 256 }
  0x47   : > { %s1507_s6 = scalar_lea.hbm %s1944_s25, 128  ;;  %p1513_p7 = scmp.lt.u32.totalorder %s1944_s25, %s2364_s1 }
  0x48   : > { %p1508_p13 = scmp.ne.s32.totalorder %s1944_s25, %s1507_s6  ;;  %p1514_p9 = scmp.lt.u32.totalorder %s1512_s26, %s1507_s6 }
  0x49   : > { %p1516_p2 = scmp.lt.u32.totalorder %s1507_s6, %s1944_s25 }
  0x4a   : > { %p1510_p3 = pnand %p1957_p0, %p1508_p13  ;;  %p1515_p1 = por %p1514_p9, %p1513_p7 }
  0x4c   : > { %p1511_p5 = pneg %p1510_p3  ;;  %p1517_p4 = por %p1516_p2, %p1515_p1 }
  0x4e   : > { %p1518_p6 = pnand %p1517_p4, %p1511_p5 }
  0x50   : > { %1521 = shalt.err (!%p1518_p6)
}
  0x51   : > { %s1522_s22 = scalar_lea.vmem %s1947_s14, 128  ;;  %s1770_s23 = smov [#allocation5]  }
  0x52   : > { %p1523_p8 = scmp.ne.s32.totalorder %s1947_s14, %s1522_s22  ;;  %s1527_s24 = sshll.u32 %s1770_s23, 4  ;;  %s1528_s24 = int_to_ptr.vmem [resolvable:$false] %s1527_s24 }
  0x53   : > { %s1529_s16 = scalar_lea.vmem %s1528_s24, 256  ;;  %p1530_p3 = scmp.lt.s32.totalorder %s1947_s14, %s1528_s24 }
  0x54   : > { %p1525_p10 = pnand %p1523_p8, %p1957_p0  ;;  %p1531_p12 = scmp.lt.s32.totalorder %s1529_s16, %s1522_s22 }
  0x56   : > { %p1526_p13 = pneg %p1525_p10  ;;  %p1532_p7 = por %p1531_p12, %p1530_p3 }
  0x58   : > { %p1533_p9 = pnand %p1532_p7, %p1526_p13 }
  0x5a   : > { %1536 = shalt.err (!%p1533_p9)
}
  0x5b   : > { %1408 = dma.hbm_to_vmem [thread:$0]  (!%p1935_p11), %s1944_s25, 128, %s1947_s14, %s1951_s29  }
  0x5c   : > { %s1985_s26 = scalar_lea.hbm %s2325_s0, %s1929_s18  ;;  %s321_s22 = scalar_lea.vmem [#allocation2], %s1933_s20 }
  0x5d   : > { %s328_s23 = sshll.u32 %s321_s22, 4  ;;  %s2366_s24 = sand.u32 1, %s1761_s11   ;;  %s329_s23 = int_to_ptr.vmem [resolvable:$true] %s328_s23 }
  0x5e   : > { %s318_s16 = scalar_lea.sflag [#allocation3], %s2366_s24  ;;  %s1537_s1 = scalar_lea.hbm %s1985_s26, 128 }
  0x5f   : > { %p1538_p12 = scmp.ne.s32.totalorder %s1985_s26, %s1537_s1  ;;  %s1542_s6 = scalar_lea.hbm %s2325_s0, 256 }
  0x60   : > { %p1543_p2 = scmp.lt.u32.totalorder %s1985_s26, %s2325_s0  ;;  %p1544_p4 = scmp.lt.u32.totalorder %s1542_s6, %s1537_s1 }
  0x61   : > { %p1540_p5 = pnand %p1538_p12, %p1957_p0  ;;  %p1546_p8 = scmp.lt.u32.totalorder %s1537_s1, %s1985_s26 }
  0x62   : > { %p1545_p6 = por %p1544_p4, %p1543_p2 }
  0x63   : > { %p1541_p1 = pneg %p1540_p5 }
  0x64   : > { %p1547_p10 = por %p1546_p8, %p1545_p6 }
  0x66   : > { %p1548_p13 = pnand %p1547_p10, %p1541_p1 }
  0x68   : > { %1551 = shalt.err (!%p1548_p13)
}
  0x69   : > { %s1552_s22 = scalar_lea.vmem %s329_s23, 128  ;;  %s1771_s24 = smov [#allocation2]  }
  0x6a   : > { %p1553_p3 = scmp.ne.s32.totalorder %s329_s23, %s1552_s22  ;;  %s1557_s11 = sshll.u32 %s1771_s24, 4  ;;  %s1558_s11 = int_to_ptr.vmem [resolvable:$false] %s1557_s11 }
  0x6b   : > { %s1559_s25 = scalar_lea.vmem %s1558_s11, 256  ;;  %p1560_p12 = scmp.lt.s32.totalorder %s329_s23, %s1558_s11 }
  0x6c   : > { %p1555_p7 = pnand %p1553_p3, %p1957_p0  ;;  %p1561_p5 = scmp.lt.s32.totalorder %s1559_s25, %s1552_s22 }
  0x6e   : > { %p1556_p9 = pneg %p1555_p7  ;;  %p1562_p11 = por %p1561_p5, %p1560_p12 }
  0x70   : > { %p1563_p2 = pnand %p1562_p11, %p1556_p9 }
  0x72   : > { %1566 = shalt.err (!%p1563_p2)
}
  0x73   : > { %p2367_p4 = scmp.ne.s32.totalorder %s2363_s19, 0  ;;  %s2011_s14 = scalar_lea.hbm %s2327_s2, %s1929_s18 }
  0x74   : > { %s357_s11 = scalar_lea.vmem [#allocation7], %s1933_s20  ;;  %s1567_s21 = scalar_lea.hbm %s2011_s14, 128 }
  0x75   : > { %1405 = dma.hbm_to_vmem [thread:$0]  (!%p2367_p4), %s1985_s26, 128, %s329_s23, %s318_s16  }
  0x76   : > { %s364_s6 = sshll.u32 %s357_s11, 4  ;;  %p1568_p11 = scmp.ne.s32.totalorder %s2011_s14, %s1567_s21  ;;  %s365_s6 = int_to_ptr.vmem [resolvable:$true] %s364_s6 }
  0x77   : > { %s1572_s26 = scalar_lea.hbm %s2327_s2, 256  ;;  %p1573_p8 = scmp.lt.u32.totalorder %s2011_s14, %s2327_s2 }
  0x78   : > { %p1570_p1 = pnand %p1568_p11, %p1957_p0  ;;  %p1574_p10 = scmp.lt.u32.totalorder %s1572_s26, %s1567_s21 }
  0x79   : > { %p1576_p3 = scmp.lt.u32.totalorder %s1567_s21, %s2011_s14 }
  0x7a   : > { %p1571_p6 = pneg %p1570_p1  ;;  %p1575_p13 = por %p1574_p10, %p1573_p8 }
  0x7c   : > { %p1577_p7 = por %p1576_p3, %p1575_p13 }
  0x7e   : > { %p1578_p9 = pnand %p1577_p7, %p1571_p6 }
  0x80   : > { %1581 = shalt.err (!%p1578_p9)
}
  0x81   : > { %s1582_s25 = scalar_lea.vmem %s365_s6, 128  ;;  %s1772_s1 = smov [#allocation7]  }
  0x82   : > { %p1583_p12 = scmp.ne.s32.totalorder %s365_s6, %s1582_s25  ;;  %s1587_s30 = sshll.u32 %s1772_s1, 4  ;;  %s1588_s30 = int_to_ptr.vmem [resolvable:$false] %s1587_s30 }
  0x83   : > { %s1589_s11 = scalar_lea.vmem %s1588_s30, 256  ;;  %p1590_p11 = scmp.lt.s32.totalorder %s365_s6, %s1588_s30 }
  0x84   : > { %p1585_p5 = pnand %p1583_p12, %p1957_p0  ;;  %p1591_p1 = scmp.lt.s32.totalorder %s1589_s11, %s1582_s25 }
  0x86   : > { %p1586_p2 = pneg %p1585_p5  ;;  %p1592_p4 = por %p1591_p1, %p1590_p11 }
  0x88   : > { %p1593_p8 = pnand %p1592_p4, %p1586_p2 }
  0x8a   : > { %1596 = shalt.err (!%p1593_p8)
}
  0x8b   : > { %p2368_p10 = scmp.ne.s32.totalorder %s2363_s19, 0  ;;  %s2036_s24 = scalar_lea.hbm %s2328_s3, %s1929_s18 }
  0x8c   : > { %s375_s26 = scalar_lea.vmem [#allocation8], %s1933_s20  ;;  %s2369_s16 = sand.u32 1, %s1765_s12  }
  0x8d   : > { %1411 = dma.hbm_to_vmem [thread:$0]  (!%p2368_p10), %s2011_s14, 128, %s365_s6, %s1951_s29  }
  0x8e   : > { %s382_s23 = sshll.u32 %s375_s26, 4  ;;  %s372_s25 = scalar_lea.sflag [#allocation9], %s2369_s16  ;;  %s383_s23 = int_to_ptr.vmem [resolvable:$true] %s382_s23 }
  0x8f   : > { %s1597_s1 = scalar_lea.hbm %s2036_s24, 128  ;;  %s1602_s6 = scalar_lea.hbm %s2328_s3, 256 }
  0x90   : > { %p1598_p4 = scmp.ne.s32.totalorder %s2036_s24, %s1597_s1  ;;  %p1603_p3 = scmp.lt.u32.totalorder %s2036_s24, %s2328_s3 }
  0x91   : > { %p1604_p7 = scmp.lt.u32.totalorder %s1602_s6, %s1597_s1  ;;  %p1606_p12 = scmp.lt.u32.totalorder %s1597_s1, %s2036_s24 }
  0x92   : > { %p1600_p6 = pnand %p1598_p4, %p1957_p0 }
  0x93   : > { %p1605_p9 = por %p1604_p7, %p1603_p3 }
  0x94   : > { %p1601_p13 = pneg %p1600_p6 }
  0x95   : > { %p1607_p5 = por %p1606_p12, %p1605_p9 }
  0x97   : > { %p1608_p2 = pnand %p1607_p5, %p1601_p13 }
  0x99   : > { %1611 = shalt.err (!%p1608_p2)
}
  0x9a   : > { %s1612_s20 = scalar_lea.vmem %s383_s23, 128  ;;  %s1773_s11 = smov [#allocation8]  }
  0x9b   : > { %p1613_p11 = scmp.ne.s32.totalorder %s383_s23, %s1612_s20  ;;  %s1617_s21 = sshll.u32 %s1773_s11, 4  ;;  %s1618_s21 = int_to_ptr.vmem [resolvable:$false] %s1617_s21 }
  0x9c   : > { %s1619_s22 = scalar_lea.vmem %s1618_s21, 256  ;;  %p1620_p4 = scmp.lt.s32.totalorder %s383_s23, %s1618_s21 }
  0x9d   : > { %p1615_p1 = pnand %p1613_p11, %p1957_p0  ;;  %p1621_p6 = scmp.lt.s32.totalorder %s1619_s22, %s1612_s20 }
  0x9f   : > { %p1616_p8 = pneg %p1615_p1  ;;  %p1622_p10 = por %p1621_p6, %p1620_p4 }
  0xa1   : > { %p1623_p3 = pnand %p1622_p10, %p1616_p8 }
  0xa3   : > { %1626 = shalt.err (!%p1623_p3)
}
  0xa4   : > { %p2370_p7 = scmp.ne.s32.totalorder %s2363_s19, 0  ;;  %p2371_p13 = scmp.ne.s32.totalorder %s2356_s17, 0 }
  0xa5   : > { %s2061_s27 = sand.u32 (!%p2371_p13), 1, %s1757_s10   ;;  %p2372_p0 = scmp.ne.s32.totalorder (!%p2371_p13), %s2353_s15, 0 }
  0xa6   : > { %1414 = dma.hbm_to_vmem [thread:$0]  (!%p2370_p7), %s2036_s24, 128, %s383_s23, %s372_s25  }
  0xa7   : > { %391 = sbr.rel (%p2371_p13) target bundleno = 713 (0x2c9), region = 48  ;;  %s2064_s26 = sshll.u32 (!%p2371_p13), %s2061_s27, 3 }
  0xa8   : > { %s394_s16 = scalar_lea.sflag (!%p2371_p13), [#allocation3], %s2061_s27  ;;  %s397_s1 = scalar_lea.vmem (!%p2371_p13), [#allocation2], %s2064_s26 }
  0xae   : > { %1728 = dma.done.wait (%p2372_p0), %s394_s16, 128  }
  0xaf   : > { %1730 = vsyncadd (%p2372_p0), %s394_s16, 4294967168  ;;  %s2073_s17 = sand.u32 1, %s1851_s13   ;;  %s406_s24 = scalar_lea.vmem [#allocation5], %s2064_s26 }
  0xb0   : > { %s403_s19 = scalar_lea.sflag [#allocation6], %s2073_s17 }
  0xb1   : > { %1732 = dma.done.wait (%p2372_p0), %s403_s19, 256  }
  0xb2   : > { %1734 = vsyncadd (%p2372_p0), %s403_s19, 4294967040  ;;  %s415_s23 = scalar_lea.vmem [#allocation7], %s2064_s26  ;;  %s421_s25 = scalar_lea.sflag [#allocation9], %s2073_s17 }
  0xb3   : > { %s424_s29 = scalar_lea.vmem [#allocation8], %s2064_s26 }
  0xb4   : > { %1736 = dma.done.wait (%p2372_p0), %s421_s25, 128  }
  0xb5   : > { %1738 = vsyncadd (%p2372_p0), %s421_s25, 4294967168  ;;  %p2373_p10 = scmp.eq.s32.totalorder %s1851_s13, 0 }
  0xb7   : > { %1740 = dma.done.wait (%p2373_p10), [#allocation9], 4096   ;;  %p2374_p9 = pmov %p2373_p10 }
  0xb8   : > { %v1774_v0 = vmov 0.0   ;;  %v494_v1 = vld [vmem:[#allocation10 + $0x8] sm:$0xff]  ;;  %v496_v2 = vld [vmem:[#allocation10 + $0x18] sm:$0xff]  ;;  %v2092_v3 = vld [vmem:[#allocation10] sm:$0xff]  ;;  %vm714_vm2 = vcmask 64512   ;;  %s473_s6 = scalar_lea.vmem [#allocation11], %s2064_s26 }
  0xb9   : > { %1742 = vsyncadd (%p2374_p9), [#allocation9], 4294963200  ;;  %670 = vmatprep.mubr.f32.mxu1 %v1774_v0  ;;  %599 = vmatprep.mubr.f32.mxu0 %v1774_v0  ;;  %v1314_v4 = vpack.c.bf16 %v496_v2, %v494_v1  ;;  %v2094_v5 = vld [vmem:[#allocation10 + $0x10] sm:$0xff]  ;;  %v498_v6 = vld [vmem:[#allocation10 + $0x28] sm:$0xff]  ;;  %s1264_s20 = sshll.u32 %s1851_s13, 7  ;;  %s994_s11 = sshll.u32 %s473_s6, 4  ;;  %s995_s11 = int_to_ptr.vmem [resolvable:$true] %s994_s11 }
  0xba   : > { %v500_v7 = vld [vmem:[#allocation10 + $0x38] sm:$0xff]  ;;  %v1316_v8 = vpack.c.bf16 %v2094_v5, %v2092_v3  ;;  %v2098_v10 = vld [vmem:[#allocation10 + $0x20] sm:$0xff]  ;;  %v2100_v11 = vld [vmem:[#allocation10 + $0x30] sm:$0xff]  ;;  %s2181_s16 = scalar_lea.hbm %s2332_s7, %s1264_s20  ;;  %s1627_s19 = scalar_lea.vmem %s995_s11, 128 }
  0xbb   : > { %v1318_v9 = vpack.c.bf16 %v500_v7, %v498_v6  ;;  %v502_v12 = vld [vmem:[#allocation10 + $0x48] sm:$0xff]  ;;  %1347 = vmatprep.subr.bf16.mxu1 %v1314_v4  ;;  %v504_v13 = vld [vmem:[#allocation10 + $0x58] sm:$0xff]  ;;  %1315 = vmatprep.subr.bf16.mxu0 %v1314_v4  ;;  %v1320_v14 = vpack.c.bf16 %v2100_v11, %v2098_v10  ;;  %v2104_v16 = vld [vmem:[#allocation10 + $0x40] sm:$0xff]  ;;  %p1628_p12 = scmp.ne.s32.totalorder %s995_s11, %s1627_s19  ;;  %p2375_p5 = scmp.ne.s32.totalorder %s2362_s28, 0 }
  0xbc   : > { %1349 = vmatpush1.bf16.msra.mxu1 %v1316_v8  ;;  %1317 = vmatpush1.bf16.msra.mxu0 %v1316_v8  ;;  %v1322_v15 = vpack.c.bf16 %v504_v13, %v502_v12  ;;  %v2106_v17 = vld [vmem:[#allocation10 + $0x50] sm:$0xff]  ;;  %v506_v18 = vld [vmem:[#allocation10 + $0x68] sm:$0xff]  ;;  %v508_v19 = vld [vmem:[#allocation10 + $0x78] sm:$0xff]  ;;  %s1775_s26 = smov [#allocation11]  }
  0xbd   : > { %1351 = vmatprep.subr.bf16.mxu1 %v1318_v9  ;;  %1319 = vmatprep.subr.bf16.mxu0 %v1318_v9  ;;  %v1324_v20 = vpack.c.bf16 %v2106_v17, %v2104_v16  ;;  %v1326_v21 = vpack.c.bf16 %v508_v19, %v506_v18  ;;  %v2110_v22 = vld [vmem:[#allocation10 + $0x60] sm:$0xff]  ;;  %v2112_v23 = vld [vmem:[#allocation10 + $0x70] sm:$0xff]  ;;  %v510_v24 = vld [vmem:[#allocation10 + $0x88] sm:$0xff]  ;;  %p1629_p2 = pnand %p1628_p12, %p2375_p5 }
  0xbe   : > { %v512_v25 = vld [vmem:[#allocation10 + $0x98] sm:$0xff]  ;;  %v1328_v28 = vpack.c.bf16 %v2112_v23, %v2110_v22  ;;  %v2118_v30 = vld [vmem:[#allocation10 + $0x80] sm:$0xff]  ;;  %v2120_v31 = vld [vmem:[#allocation10 + $0x90] sm:$0xff] }
  0xbf   : > { %v488_v26 = vld [vmem:[%s406_s24] sm:$0xff]  ;;  %v1330_v29 = vpack.c.bf16 %v512_v25, %v510_v24  ;;  %v514_v32 = vld [vmem:[#allocation10 + $0xa8] sm:$0xff]  ;;  %v1332_v34 = vpack.c.bf16 %v2120_v31, %v2118_v30  ;;  %v2124_v36 = vld [vmem:[#allocation10 + $0xa0] sm:$0xff]  ;;  %p1630_p11 = pneg %p1629_p2  ;;  %s1631_s24 = sshll.u32 %s1775_s26, 4  ;;  %s1632_s24 = int_to_ptr.vmem [resolvable:$false] %s1631_s24 }
  0xc0   : > { %1353 = vmatpush1.bf16.msra.mxu1 %v1320_v14  ;;  %1321 = vmatpush1.bf16.msra.mxu0 %v1320_v14  ;;  %v532_v27 = vmul.f32 1.442695, %v488_v26  ;;  %v516_v33 = vld [vmem:[#allocation10 + $0xb8] sm:$0xff]  ;;  %v2126_v37 = vld [vmem:[#allocation10 + $0xb0] sm:$0xff]  ;;  %v518_v38 = vld [vmem:[#allocation10 + $0xc8] sm:$0xff]  ;;  %v531_v41 = vadd.f32 1.0, %v488_v26  ;;  %p1634_p1 = scmp.lt.s32.totalorder %s995_s11, %s1632_s24 }
  0xc1   : > { %1355 = vmatprep.subr.bf16.mxu1 %v1322_v15  ;;  %1323 = vmatprep.subr.bf16.mxu0 %v1322_v15  ;;  %v1334_v35 = vpack.c.bf16 %v516_v33, %v514_v32  ;;  %v520_v39 = vld [vmem:[#allocation10 + $0xd8] sm:$0xff]  ;;  %v1336_v40 = vpack.c.bf16 %v2126_v37, %v2124_v36  ;;  %v2130_v43 = vld [vmem:[#allocation10 + $0xc0] sm:$0xff]  ;;  %v2132_v44 = vld [vmem:[#allocation10 + $0xd0] sm:$0xff]  ;;  %vm530_vm0 = vcmp.gt.f32.partialorder %v488_v26, 0.0 }
  0xc2   : > { %1467 = vpow2.f32 %v532_v27  ;;  %v1338_v42 = vpack.c.bf16 %v520_v39, %v518_v38  ;;  %v522_v45 = vld [vmem:[#allocation10 + $0xe8] sm:$0xff]  ;;  %v524_v46 = vld [vmem:[#allocation10 + $0xf8] sm:$0xff]  ;;  %v1340_v48 = vpack.c.bf16 %v2132_v44, %v2130_v43  ;;  %v2138_v51 = vld [vmem:[#allocation10 + $0xe0] sm:$0xff] }
  0xc3   : > { %v1342_v50 = vpack.c.bf16 %v524_v46, %v522_v45  ;;  %v2140_v52 = vld [vmem:[#allocation10 + $0xf0] sm:$0xff]  ;;  %v487_v53 = vld [vmem:[%s397_s1] sm:$0xff]  ;;  %s972_s1 = scalar_lea.sflag [#allocation4], %s2061_s27 }
  0xc4   : > { %1357 = vmatpush1.bf16.msra.mxu1 %v1324_v20  ;;  %1325 = vmatpush1.bf16.msra.mxu0 %v1324_v20  ;;  %v527_v54 = vmul.f32 1.442695, %v487_v53  ;;  %v1344_v55 = vpack.c.bf16 %v2140_v52, %v2138_v51  ;;  %v526_v56 = vadd.f32 1.0, %v487_v53  ;;  %vm525_vm1 = vcmp.gt.f32.partialorder %v487_v53, 0.0  ;;  %v489_v19 = vld [vmem:[%s415_s23] sm:$0xff]  ;;  %s1633_s23 = scalar_lea.vmem %s1632_s24, 256 }
  0xc5   : > { %1359 = vmatprep.subr.bf16.mxu1 %v1326_v21  ;;  %1327 = vmatprep.subr.bf16.mxu0 %v1326_v21  ;;  %p1635_p8 = scmp.lt.s32.totalorder %s1633_s23, %s1627_s19 }
  0xc6   : > { %1469 = vpow2.f32 %v527_v54 }
  0xc7   : > { %p1636_p4 = por %p1635_p8, %p1634_p1 }
  0xc8   : > { %1361 = vmatpush1.bf16.msra.mxu1 %v1328_v28  ;;  %1329 = vmatpush1.bf16.msra.mxu0 %v1328_v28 }
  0xc9   : > { %1363 = vmatprep.subr.bf16.mxu1 %v1330_v29  ;;  %1331 = vmatprep.subr.bf16.mxu0 %v1330_v29  ;;  %v491_v29 = vld [vmem:[%s2329_s4] sm:$0x1]  ;;  %p1637_p6 = pnand %p1636_p4, %p1630_p11 }
  0xca   : > { %v1261_v32 = vmul.f32 -1.442695, %v491_v29 }
  0xcc   : > { %1365 = vmatpush1.bf16.msra.mxu1 %v1332_v34  ;;  %1333 = vmatpush1.bf16.msra.mxu0 %v1332_v34  ;;  %v1468_v47 = vpop.eup %1467 }
  0xcd   : > { %1367 = vmatprep.subr.bf16.mxu1 %v1334_v35  ;;  %1335 = vmatprep.subr.bf16.mxu0 %v1334_v35  ;;  %v2136_v49 = vsel %vm530_vm0, %v531_v41, %v1468_v47  ;;  %v955_v35 = vlaneseq  ;;  %v490_v47 = vld [vmem:[%s424_s29] sm:$0xff] }
  0xce   : > { %682 = vxpose.xlu0.b32.start.end [1/1] (short) %v2136_v49, 128 }
  0xcf   : > { %v956_v38 = vshrl.u32 %v955_v35, 7 }
  0xd0   : > { %1369 = vmatpush1.bf16.msra.mxu1 %v1336_v40  ;;  %1337 = vmatpush1.bf16.msra.mxu0 %v1336_v40  ;;  %v1470_v57 = vpop.eup %1469  ;;  %v940_v40 = vrot.slane %v2136_v49, 4 }
  0xd1   : > { %1371 = vmatprep.subr.bf16.mxu1 %v1338_v42  ;;  %1339 = vmatprep.subr.bf16.mxu0 %v1338_v42  ;;  %v529_v58 = vsel %vm525_vm1, %v526_v56, %v1470_v57  ;;  %v957_v41 = vsub.s32 0, %v956_v38 }
  0xd4   : > { %1373 = vmatpush1.bf16.msra.mxu1 %v1340_v48  ;;  %1341 = vmatpush1.bf16.msra.mxu0 %v1340_v48  ;;  %v941_v48 = vadd.f32 %v940_v40, %v2136_v49 }
  0xd5   : > { %1375 = vmatprep.subr.bf16.mxu1 %v1342_v50  ;;  %1343 = vmatprep.subr.bf16.mxu0 %v1342_v50 }
  0xd8   : > { %1377 = vmatpush1.bf16.msra.mxu1 %v1344_v55  ;;  %1345 = vmatpush1.bf16.msra.mxu0 %v1344_v55  ;;  %v942_v55 = vrot.slane %v941_v48, 2 }
  0xda   : > { %v943_v56 = vadd.f32 %v942_v55, %v941_v48 }
  0xdb   : > { %671 = vmatmul.mubr.f32.vlgmr.msra.gmra.mrb[0].mxu1 %v2136_v49  ;;  %600 = vmatmul.mubr.f32.vlgmr.msra.gmra.mrb[0].mxu0 %v529_v58 }
  0xdc   : > { %v944_v57 = vrot.slane %v943_v56, 1 }
  0xde   : > { %v945_v58 = vadd.f32 %v944_v57, %v943_v56 }
 0x14e   : > { %v698_v59 = vpop.trf.xlu0 }
 0x14f   : > { %1290 = vmatprep.mubr.msk.f32.mxu0 %vm714_vm2, %v698_v59  ;;  %v492_v59 = vld [vmem:[%s2330_s5] sm:$0x1] }
 0x152   : > { %v699_v60 = vpop.trf.xlu0 }
 0x156   : > { %v700_v61 = vpop.trf.xlu0 }
 0x15a   : > { %v701_v62 = vpop.trf.xlu0 }
 0x15e   : > { %v702_v63 = vpop.trf.xlu0 }
 0x162   : > { %v703_v0 = vpop.trf.xlu0 }
 0x166   : > { %v704_v1 = vpop.trf.xlu0 }
 0x16a   : > { %v705_v2 = vpop.trf.xlu0 }
 0x16e   : > { %v706_v4 = vpop.trf.xlu0 }
 0x16f   : > { %1302 = vmatprep.mubr.msk.f32.mxu1 %vm714_vm2, %v706_v4 }
 0x172   : > { %v707_v6 = vpop.trf.xlu0 }
 0x176   : > { %v708_v7 = vpop.trf.xlu0 }
 0x17a   : > { %v709_v12 = vpop.trf.xlu0 }
 0x17e   : > { %v710_v15 = vpop.trf.xlu0 }
 0x182   : > { %v711_v24 = vpop.trf.xlu0 }
 0x186   : > { %v712_v27 = vpop.trf.xlu0 }
 0x18a   : > { %v713_v28 = vpop.trf.xlu0 }
 0x1ae   : > { %v672_v8 = vpop.f32.mrb[0].mxu1  ;;  %v601_v13 = vpop.f32.mrb[0].mxu0 }
 0x1af   : > { %v674_v9 = vpop.f32.mrb[1].mxu1  ;;  %v603_v14 = vpop.f32.mrb[1].mxu0 }
 0x1b0   : > { %1471 = vrcp.f32 %v674_v9 }
 0x1b1   : > { %1473 = vrcp.f32 %v603_v14 }
 0x1b2   : > { %1475 = vpow2.f32 %v1261_v32 }
 0x1ba   : > { %v1472_v18 = vpop.eup %1471 }
 0x1bb   : > { %v680_v20 = vmul.f32 %v1472_v18, %v672_v8  ;;  %v1474_v25 = vpop.eup %1473 }
 0x1bc   : > { %v678_v26 = vmul.f32 %v1474_v25, %v601_v13  ;;  %v1476_v33 = vpop.eup %1475 }
 0x1bd   : > { %v681_v21 = vsub.f32 %v489_v19, %v680_v20  ;;  %v951_v34 = vadd.f32 1.0, %v1476_v33 }
 0x1bf   : > { %1288 = vmatprep.subr.mxu0 %v681_v21  ;;  %1378 = vmatprep.subr.mxu1 %v681_v21  ;;  %1477 = vrcp.f32 %v951_v34 }
 0x1c0   : > { %1289 = vmatpush3.msra.mxu0 %v681_v21  ;;  %1379 = vmatpush3.msra.mxu1 %v681_v21 }
 0x1c1   : > { %1291 = vmatmul.mubr.msk.f32.vlgmr.msra.gmra.mrb[2].mxu0 %vm714_vm2, %v699_v60  ;;  %1303 = vmatmul.mubr.msk.f32.vlgmr.msra.gmra.mrb[2].mxu1 %vm714_vm2, %v707_v6  ;;  %v946_v60 = vadd.f32 %v945_v58, %v492_v59 }
 0x1c2   : > { %1293 = vmatprep.mubr.msk.f32.mxu0 %vm714_vm2, %v700_v61  ;;  %1305 = vmatprep.mubr.msk.f32.mxu1 %vm714_vm2, %v708_v7 }
 0x1c5   : > { %1294 = vmatmul.mubr.msk.f32.gmra.mrb[4].mxu0 %vm714_vm2, %v701_v62  ;;  %1306 = vmatmul.mubr.msk.f32.gmra.mrb[4].mxu1 %vm714_vm2, %v709_v12 }
 0x1c6   : > { %1296 = vmatprep.mubr.msk.f32.mxu0 %vm714_vm2, %v702_v63  ;;  %1308 = vmatprep.mubr.msk.f32.mxu1 %vm714_vm2, %v710_v15 }
 0x1c9   : > { %1297 = vmatmul.mubr.msk.f32.gmra.mrb[6].mxu0 %vm714_vm2, %v703_v0  ;;  %1309 = vmatmul.mubr.msk.f32.gmra.mrb[6].mxu1 %vm714_vm2, %v711_v24  ;;  %v1478_v39 = vpop.eup %1477 }
 0x1ca   : > { %1299 = vmatprep.mubr.msk.f32.mxu0 %vm714_vm2, %v704_v1  ;;  %1311 = vmatprep.mubr.msk.f32.mxu1 %vm714_vm2, %v712_v27  ;;  %v961_v42 = vsub.f32 1.0, %v1478_v39  ;;  %v958_v45 = vrot.slane %v1478_v39, %v957_v41 }
 0x1cc   : > { %v966_v46 = vrot.slane %v961_v42, %v957_v41  ;;  %v960_v50 = vmul.f32 %v958_v45, %v678_v26 }
 0x1cd   : > { %1300 = vmatmul.mubr.msk.f32.gmra.mrb[8].mxu0 %vm714_vm2, %v705_v2  ;;  %1312 = vmatmul.mubr.msk.f32.gmra.mrb[8].mxu1 %vm714_vm2, %v713_v28 }
 0x1ce   : > { %v968_v53 = vmul.f32 %v966_v46, %v490_v47 }
 0x1d0   : > { %v969_v54 = vadd.f32 %v968_v53, %v960_v50 }
 0x1d2   : > { %970 = vst [vmem:[%s473_s6] sm:$0xff] %v969_v54 }
 0x1d3   : > { %1640 = shalt.err (!%p1637_p6)
}
 0x1d4   : > { %s1641_s25 = scalar_lea.hbm %s2181_s16, 128  ;;  %s1645_s14 = scalar_lea.hbm %s2332_s7, 256 }
 0x1d5   : > { %p1642_p3 = scmp.ne.s32.totalorder %s2181_s16, %s1641_s25  ;;  %p1646_p0 = scmp.lt.u32.totalorder %s2181_s16, %s2332_s7 }
 0x1d6   : > { %p1647_p10 = scmp.lt.u32.totalorder %s1645_s14, %s1641_s25  ;;  %p1649_p12 = scmp.lt.u32.totalorder %s1641_s25, %s2181_s16 }
 0x1d7   : > { %p1643_p7 = pnand %p1642_p3, %p2375_p5 }
 0x1d8   : > { %p1648_p9 = por %p1647_p10, %p1646_p0 }
 0x1d9   : > { %p1644_p13 = pneg %p1643_p7 }
 0x1da   : > { %p1650_p2 = por %p1649_p12, %p1648_p9 }
 0x1dc   : > { %p1651_p11 = pnand %p1650_p2, %p1644_p13 }
 0x1de   : > { %1654 = shalt.err (!%p1651_p11)
}
 0x1df   : > { %1392 = dma.vmem_to_hbm [thread:$0]  (%p2375_p5), %s995_s11, 128, %s2181_s16, %s972_s1  }
 0x1e0   : > { %s486_s30 = scalar_lea.vmem [#allocation14], %s2061_s27  ;;  %s1244_s20 = sshll.u32 %s2061_s27, 7 }
 0x1e1   : > { %947 = vst [vmem:[%s486_s30] sm:$0x1] %v946_v60  ;;  %s2209_s21 = scalar_lea.vmem [#allocation12], %s1244_s20  ;;  %s1270_s11 = sshll.u32 %s1851_s13, 11 }
 0x1e2   : > { %s1007_s22 = sshll.u32 %s2209_s21, 4  ;;  %s1267_s16 = sshll.u32 %s1851_s13, 4  ;;  %s2243_s22 = int_to_ptr.vmem [resolvable:$true] %s1007_s22 }
 0x1e3   : > { %s1023_s1 = sshll.u32 %s486_s30, 4  ;;  %s2241_s24 = scalar_lea.hbm %s2333_s8, %s1270_s11  ;;  %s2254_s1 = int_to_ptr.vmem [resolvable:$true] %s1023_s1 }
 0x1e4   : > { %s2252_s23 = scalar_lea.hbm %s2334_s9, %s1267_s16  ;;  %s977_s25 = scalar_lea.sflag [#allocation13], %s2073_s17 }
 0x1e5   : > { %s1655_s29 = scalar_lea.vmem %s2243_s22, 2048  ;;  %s1776_s15 = smov [#allocation12]  }
 0x1e6   : > { %p1656_p1 = scmp.ne.s32.totalorder %s2243_s22, %s1655_s29  ;;  %s1659_s14 = sshll.u32 %s1776_s15, 4  ;;  %s1660_s14 = int_to_ptr.vmem [resolvable:$false] %s1659_s14 }
 0x1e7   : > { %s1661_s6 = scalar_lea.vmem %s1660_s14, 4096  ;;  %p1662_p6 = scmp.lt.s32.totalorder %s2243_s22, %s1660_s14 }
 0x1e8   : > { %p1657_p8 = pnand %p1656_p1, %p2375_p5  ;;  %p1663_p3 = scmp.lt.s32.totalorder %s1661_s6, %s1655_s29 }
 0x1ea   : > { %p1658_p4 = pneg %p1657_p8  ;;  %p1664_p7 = por %p1663_p3, %p1662_p6 }
 0x1ec   : > { %p1665_p13 = pnand %p1664_p7, %p1658_p4 }
 0x294   : > { %v1292_v49 = vpop.f32.mrb[2].mxu0  ;;  %v1304_v61 = vpop.f32.mrb[2].mxu1 }
 0x295   : > { %v909_v62 = vadd.f32 %v1292_v49, %v2094_v5  ;;  %v917_v63 = vadd.f32 %v1304_v61, %v2120_v31  ;;  %v829_v0 = vpop.f32.mrb[3].mxu0  ;;  %v869_v1 = vpop.f32.mrb[3].mxu1 }
 0x296   : > { %v908_v2 = vadd.f32 %v829_v0, %v2092_v3  ;;  %v916_v4 = vadd.f32 %v869_v1, %v2118_v30 }
 0x297   : > { %925 = vst [vmem:[%s2209_s21 + $0x8] sm:$0xff] %v909_v62  ;;  %933 = vst [vmem:[%s2209_s21 + $0x48] sm:$0xff] %v917_v63 }
 0x298   : > { %924 = vst [vmem:[%s2209_s21] sm:$0xff] %v908_v2  ;;  %932 = vst [vmem:[%s2209_s21 + $0x40] sm:$0xff] %v916_v4  ;;  %v1295_v5 = vpop.f32.mrb[4].mxu0  ;;  %v1307_v31 = vpop.f32.mrb[4].mxu1 }
 0x299   : > { %v911_v3 = vadd.f32 %v1295_v5, %v2100_v11  ;;  %v919_v30 = vadd.f32 %v1307_v31, %v2126_v37  ;;  %v839_v6 = vpop.f32.mrb[5].mxu0  ;;  %v879_v7 = vpop.f32.mrb[5].mxu1 }
 0x29a   : > { %v910_v8 = vadd.f32 %v839_v6, %v2098_v10  ;;  %v918_v9 = vadd.f32 %v879_v7, %v2124_v36 }
 0x29b   : > { %927 = vst [vmem:[%s2209_s21 + $0x18] sm:$0xff] %v911_v3  ;;  %935 = vst [vmem:[%s2209_s21 + $0x58] sm:$0xff] %v919_v30 }
 0x29c   : > { %926 = vst [vmem:[%s2209_s21 + $0x10] sm:$0xff] %v910_v8  ;;  %934 = vst [vmem:[%s2209_s21 + $0x50] sm:$0xff] %v918_v9  ;;  %v1298_v12 = vpop.f32.mrb[6].mxu0  ;;  %v1310_v11 = vpop.f32.mrb[6].mxu1 }
 0x29d   : > { %v913_v37 = vadd.f32 %v1298_v12, %v2106_v17  ;;  %v921_v13 = vadd.f32 %v1310_v11, %v2132_v44  ;;  %v849_v14 = vpop.f32.mrb[7].mxu0  ;;  %v889_v10 = vpop.f32.mrb[7].mxu1 }
 0x29e   : > { %v912_v15 = vadd.f32 %v849_v14, %v2104_v16  ;;  %v920_v36 = vadd.f32 %v889_v10, %v2130_v43 }
 0x29f   : > { %929 = vst [vmem:[%s2209_s21 + $0x28] sm:$0xff] %v913_v37  ;;  %937 = vst [vmem:[%s2209_s21 + $0x68] sm:$0xff] %v921_v13 }
 0x2a0   : > { %928 = vst [vmem:[%s2209_s21 + $0x20] sm:$0xff] %v912_v15  ;;  %936 = vst [vmem:[%s2209_s21 + $0x60] sm:$0xff] %v920_v36  ;;  %v1301_v18 = vpop.f32.mrb[8].mxu0  ;;  %v1313_v19 = vpop.f32.mrb[8].mxu1 }
 0x2a1   : > { %v915_v16 = vadd.f32 %v1301_v18, %v2112_v23  ;;  %v859_v17 = vpop.f32.mrb[9].mxu0  ;;  %v923_v43 = vadd.f32 %v1313_v19, %v2140_v52  ;;  %v899_v44 = vpop.f32.mrb[9].mxu1 }
 0x2a2   : > { %v914_v20 = vadd.f32 %v859_v17, %v2110_v22  ;;  %v922_v21 = vadd.f32 %v899_v44, %v2138_v51 }
 0x2a3   : > { %931 = vst [vmem:[%s2209_s21 + $0x38] sm:$0xff] %v915_v16  ;;  %939 = vst [vmem:[%s2209_s21 + $0x78] sm:$0xff] %v923_v43 }
 0x2a4   : > { %930 = vst [vmem:[%s2209_s21 + $0x30] sm:$0xff] %v914_v20  ;;  %938 = vst [vmem:[%s2209_s21 + $0x70] sm:$0xff] %v922_v21 }
 0x2a5   : > { %1668 = shalt.err (!%p1665_p13)
}
 0x2a6   : > { %s1669_s18 = scalar_lea.hbm %s2241_s24, 2048  ;;  %s1673_s21 = scalar_lea.hbm %s2333_s8, 4096 }
 0x2a7   : > { %p1670_p0 = scmp.ne.s32.totalorder %s2241_s24, %s1669_s18  ;;  %p1674_p12 = scmp.lt.u32.totalorder %s2241_s24, %s2333_s8 }
 0x2a8   : > { %p1675_p2 = scmp.lt.u32.totalorder %s1673_s21, %s1669_s18  ;;  %p1677_p1 = scmp.lt.u32.totalorder %s1669_s18, %s2241_s24 }
 0x2a9   : > { %p1671_p10 = pnand %p1670_p0, %p2375_p5 }
 0x2aa   : > { %p1676_p11 = por %p1675_p2, %p1674_p12 }
 0x2ab   : > { %p1672_p9 = pneg %p1671_p10 }
 0x2ac   : > { %p1678_p8 = por %p1677_p1, %p1676_p11 }
 0x2ae   : > { %p1679_p4 = pnand %p1678_p8, %p1672_p9 }
 0x2b0   : > { %1682 = shalt.err (!%p1679_p4)
}
 0x2b1   : > { %s1777_s19 = smov 128   ;;  %s1778_s26 = smov 8  }
 0x2b2   : > { %1393 = dma.vmem_to_hbm [thread:$0]  (%p2375_p5), %s2243_s22, 2048, %s2241_s24, %s977_s25, %s1777_s19, %s1777_s19, %s1778_s26  }
 0x2b3   : > { %s1683_s13 = scalar_lea.vmem %s2254_s1, 16  ;;  %s1779_s27 = smov [#allocation14]  }
 0x2b4   : > { %p1684_p6 = scmp.ne.s32.totalorder %s2254_s1, %s1683_s13  ;;  %s1687_s29 = sshll.u32 %s1779_s27, 4  ;;  %s1688_s29 = int_to_ptr.vmem [resolvable:$false] %s1687_s29 }
 0x2b5   : > { %s1689_s15 = scalar_lea.vmem %s1688_s29, 32  ;;  %p1690_p13 = scmp.lt.s32.totalorder %s2254_s1, %s1688_s29 }
 0x2b6   : > { %p1685_p3 = pnand %p1684_p6, %p2375_p5  ;;  %p1691_p0 = scmp.lt.s32.totalorder %s1689_s15, %s1683_s13 }
 0x2b8   : > { %p1686_p7 = pneg %p1685_p3  ;;  %p1692_p10 = por %p1691_p0, %p1690_p13 }
 0x2ba   : > { %p1693_p9 = pnand %p1692_p10, %p1686_p7 }
 0x2bc   : > { %1696 = shalt.err (!%p1693_p9)
}
 0x2bd   : > { %s1697_s22 = scalar_lea.hbm %s2252_s23, 16  ;;  %s1701_s6 = scalar_lea.hbm %s2334_s9, 32 }
 0x2be   : > { %p1698_p12 = scmp.ne.s32.totalorder %s2252_s23, %s1697_s22  ;;  %p1702_p1 = scmp.lt.u32.totalorder %s2252_s23, %s2334_s9 }
 0x2bf   : > { %p1703_p8 = scmp.lt.u32.totalorder %s1701_s6, %s1697_s22  ;;  %p1705_p6 = scmp.lt.u32.totalorder %s1697_s22, %s2252_s23 }
 0x2c0   : > { %p1699_p2 = pnand %p1698_p12, %p2375_p5 }
 0x2c1   : > { %p1704_p4 = por %p1703_p8, %p1702_p1 }
 0x2c2   : > { %p1700_p11 = pneg %p1699_p2 }
 0x2c3   : > { %p1706_p3 = por %p1705_p6, %p1704_p4 }
 0x2c5   : > { %p1707_p7 = pnand %p1706_p3, %p1700_p11 }
 0x2c7   : > { %1710 = shalt.err (!%p1707_p7)
}
 0x2c8   : > { %1394 = dma.vmem_to_hbm [thread:$0]  (%p2375_p5), %s2254_s1, 16, %s2252_s23, %s977_s25  }
 0x2c9 PF: > { %s2376_s20 = sld [smem:[#allocation21_spill]]  ;;  %s2377_s21 = sld [smem:[#allocation23_spill]] }
 0x2ca   : > { %p2379_p0 = scmp.ge.s32.totalorder %s1765_s12, 2 }
 0x2cf   : > { %s1035_s11 = sand.u32 1, %s2376_s20   ;;  %p2378_p13 = scmp.ne.s32.totalorder %s2377_s21, 0 }
 0x2d0   : > { %s1036_s16 = scalar_lea.sflag [#allocation4], %s1035_s11 }
 0x2d1   : > { %p1416_p10 = pnand %p2379_p0, %p2378_p13 }
 0x2d3   : > { %1744 = dma.done.wait (!%p1416_p10), %s1036_s16, 128  }
 0x2d4   : > { %1746 = vsyncadd (!%p1416_p10), %s1036_s16, 4294967168  ;;  %s2380_s19 = sadd.s32 4294967294, %s1765_s12  }
 0x2d5   : > { %s1044_s26 = sand.u32 1, %s2380_s19  }
 0x2d6   : > { %s1045_s28 = scalar_lea.sflag [#allocation13], %s1044_s26 }
 0x2d7   : > { %1748 = dma.done.wait (!%p1416_p10), %s1045_s28, 2064  }
 0x2d8   : > { %1750 = vsyncadd (!%p1416_p10), %s1045_s28, 4294965232  ;;  %s2381_s12 = sld [smem:[#allocation24_spill]]  ;;  %s2382_s17 = sld [smem:[#allocation22_spill]] }
 0x2d9   : > { %s2383_s11 = sld [smem:[#allocation25_spill]]  ;;  %s2384_s30 = smov %s1757_s10 }
 0x2de   : > { %p32_p5 = scmp.ge.s32.totalorder %s2381_s12, 4   ;;  %s2385_s10 = smov %s2382_s17 }
 0x2e0   :  { %34 = sbr.rel (!%p32_p5) target bundleno = 14 (0xe), region = 166 }
 0x2e7   :  { %1058 = vsyncpa [#allocation3], 1 }
 0x2e8   :  { %1060 = vsyncpa [#allocation3 + $0x1], 1 }
 0x2e9   :  { %1061 = vsyncpa [#allocation6], 1 }
 0x2ea   :  { %1063 = vsyncpa [#allocation6 + $0x1], 1 }
 0x2eb   :  { %1064 = vsyncpa [#allocation9], 1 }
 0x2ec   :  { %1066 = vsyncpa [#allocation9 + $0x1], 1 }
 0x2ed   :  { %1067 = vsyncpa [#allocation4], 1 }
 0x2ee   :  { %1069 = vsyncpa [#allocation4 + $0x1], 1 }
 0x2ef   :  { %1070 = vsyncpa [#allocation13], 1 }
 0x2f0   :  { %1072 = vsyncpa [#allocation13 + $0x1], 1 }

</bundles_post_ra>
